<compile_context>
chip_gen: v5e
topology: v5e:2x2
jax: 0.10.0
libtpu: 0.0.40
codegen_flags: <defaults>
</compile_context>

<pallas_src>
import functools
import math

import jax
import jax.numpy as jnp
from jax.experimental import pallas as pl
from jax.experimental.pallas import tpu as pltpu


def _bert_head_kernel(x_ref, w_ref, b_ref, g_ref, beta_ref, o_ref, *, eps,
                      compute_dtype, approximate_gelu):
    # x_ref:   (TR, H)  token tile (streamed / pipelined)
    # w_ref:   (H, H)   dense weight in torch (out, in) layout, resident in VMEM
    # b_ref:   (1, H)   bias   (f32, resident)
    # g_ref:   (1, H)   gamma  (f32, resident)
    # beta_ref:(1, H)   beta   (f32, resident)
    # o_ref:   (TR, H)  output tile
    x = x_ref[...]
    if compute_dtype is not None and x.dtype != compute_dtype:
        x = x.astype(compute_dtype)          # per-tile cast: hit the bf16 MXU path

    # x @ W^T without materializing a transposed weight: contract last dims.
    y = jax.lax.dot_general(
        x, w_ref[...],
        dimension_numbers=(((1,), (1,)), ((), ())),
        preferred_element_type=jnp.float32)

    y = y + b_ref[...]                        # (1,H) broadcasts over rows

    if approximate_gelu:
        # tanh form -> EUP slot (not bit-exact vs HF "gelu")
        y = jax.nn.gelu(y, approximate=True)
    else:
        # Exact GELU (erf form) == torch.nn.functional.gelu / ACT2FN["gelu"].
        y = 0.5 * y * (1.0 + jax.lax.erf(y * (1.0 / math.sqrt(2.0))))

    # Single-pass LayerNorm stats: var = E[y^2] - E[y]^2 (biased, like torch).
    mean = jnp.mean(y, axis=-1, keepdims=True)
    mean_sq = jnp.mean(y * y, axis=-1, keepdims=True)
    var = jnp.maximum(mean_sq - mean * mean, 0.0)
    normed = (y - mean) * jax.lax.rsqrt(var + eps)

    o_ref[...] = (normed * g_ref[...] + beta_ref[...]).astype(o_ref.dtype)


def bert_prediction_head_transform(hidden_states, dense_w, dense_b,
                                   ln_gamma, ln_beta, *, eps=1e-12,
                                   row_tile=1024,
                                   compute_dtype=jnp.bfloat16,
                                   approximate_gelu=False,
                                   out_dtype=None,
                                   input_buffering=2):
    """hidden_states: (B, S, H); dense_w: (H_out, H_in) torch layout; 1-D params.

    compute_dtype: dtype fed to the MXU (default bf16; None = native/exact f32).
    input_buffering: >2 enables deeper pipelining of the streamed x/out tiles
    (useful on v6e when the kernel is HBM-bound).
    """
    B, S, H = hidden_states.shape
    R = B * S
    out_dtype = hidden_states.dtype if out_dtype is None else out_dtype

    x2d = hidden_states.reshape(R, H)

    # Weight stays in torch (out, in) layout (no transpose); cast once here.
    # NOTE: in a real model this cast belongs at parameter-load time, not per call.
    w = dense_w if compute_dtype is None else dense_w.astype(compute_dtype)

    bias = dense_b.astype(jnp.float32).reshape(1, H)
    gamma = ln_gamma.astype(jnp.float32).reshape(1, H)
    beta = ln_beta.astype(jnp.float32).reshape(1, H)

    def rup(a, m):
        return ((a + m - 1) // m) * m

    # Row tile: large (amortizes ~0.35us per grid step), multiple of 8 sublanes,
    # never bigger than the (8-aligned) row count.  Ragged last block is handled
    # by Pallas masking, not by padding the array.
    tile = max(8, min(int(row_tile), rup(R, 8)))
    tile = rup(tile, 8)
    # Give the second TensorCore (v7x) / megacore something to do when R is small.
    if pl.cdiv(R, tile) < 2 and R > 8:
        tile = rup(pl.cdiv(R, 2), 8)

    # VMEM budget, capped at the real per-core capacity (v7x has only 64 MiB).
    try:
        vmem_cap = int(pltpu.get_tpu_info().vmem_capacity_bytes)
    except Exception:
        vmem_cap = 64 * 1024 * 1024
    vmem_cap = int(vmem_cap * 0.9)            # headroom for compiler scratch

    x_b = x2d.dtype.itemsize
    o_b = jnp.dtype(out_dtype).itemsize
    w_b = w.dtype.itemsize
    resident = H * H * w_b + 3 * H * 4        # weight + bias/gamma/beta

    def footprint(t):
        return (max(2, input_buffering) * t * H * x_b   # streamed x tiles
                + 2 * t * H * o_b                       # streamed out tiles
                + 4 * t * H * 4                         # f32 epilogue temps
                + resident)

    while footprint(tile) > vmem_cap and tile > 8:
        tile = max(8, rup(tile // 2, 8))
    # TODO(synk): if the resident H*H weight alone exceeds VMEM (H >~ 4096 bf16 on
    # v7x's 64 MiB), tile W along the output dim with a second grid axis instead.

    grid = (pl.cdiv(R, tile),)
    vmem_limit = int(min(vmem_cap, max(32 * 1024 * 1024,
                                       int(1.5 * footprint(tile)))))

    cost = pl.CostEstimate(
        flops=2 * R * H * H,
        transcendentals=R * H,
        bytes_accessed=R * H * (x_b + o_b) + H * H * w_b + 3 * H * 4,
    )

    stream_kwargs = {}
    if input_buffering != 2:
        stream_kwargs = dict(pipeline_mode=pl.Buffered(int(input_buffering)))

    kernel = functools.partial(_bert_head_kernel, eps=eps,
                               compute_dtype=compute_dtype,
                               approximate_gelu=approximate_gelu)

    out2d = pl.pallas_call(
        kernel,
        out_shape=jax.ShapeDtypeStruct((R, H), out_dtype),
        grid_spec=pltpu.PrefetchScalarGridSpec(
            num_scalar_prefetch=0,
            grid=grid,
            in_specs=[
                pl.BlockSpec((tile, H), lambda i: (i, 0), **stream_kwargs),      # x
                pl.BlockSpec(memory_space=pltpu.MemorySpace.VMEM),               # W
                pl.BlockSpec(memory_space=pltpu.MemorySpace.VMEM),               # bias
                pl.BlockSpec(memory_space=pltpu.MemorySpace.VMEM),               # gamma
                pl.BlockSpec(memory_space=pltpu.MemorySpace.VMEM),               # beta
            ],
            out_specs=pl.BlockSpec((tile, H), lambda i: (i, 0), **stream_kwargs),
        ),
        compiler_params=pltpu.CompilerParams(
            dimension_semantics=("parallel",),
            vmem_limit_bytes=vmem_limit,
        ),
        cost_estimate=cost,
    )(x2d, w, bias, gamma, beta)

    return out2d.reshape(B, S, H)


if __name__ == "__main__":
    # Small config: batch=2, seq=8, hidden=32 (real BERT H is a multiple of 128;
    # this tiny H is only for the correctness demo).
    B, S, H = 2, 8, 32
    eps = 1e-12

    key = jax.random.PRNGKey(0)
    k_x, k_w, k_b, k_g, k_beta = jax.random.split(key, 5)

    x = jax.random.normal(k_x, (B, S, H), dtype=jnp.float32)
    dense_w = jax.random.normal(k_w, (H, H), dtype=jnp.float32) * 0.02   # (out, in)
    dense_b = jax.random.normal(k_b, (H,), dtype=jnp.float32) * 0.02
    ln_gamma = jnp.ones((H,), dtype=jnp.float32) + 0.01 * jax.random.normal(k_g, (H,))
    ln_beta = 0.01 * jax.random.normal(k_beta, (H,), dtype=jnp.float32)

    # Plain-JAX f32 reference (same math as the torch module).
    y_ref = x @ dense_w.T + dense_b
    y_ref = 0.5 * y_ref * (1.0 + jax.lax.erf(y_ref / jnp.sqrt(2.0)))
    mean = jnp.mean(y_ref, axis=-1, keepdims=True)
    var = jnp.mean((y_ref - mean) ** 2, axis=-1, keepdims=True)
    y_ref = (y_ref - mean) * jax.lax.rsqrt(var + eps) * ln_gamma + ln_beta

    # 1) Bit-faithful f32 path (exact erf-GELU, f32 matmul).
    out_f32 = bert_prediction_head_transform(
        x, dense_w, dense_b, ln_gamma, ln_beta, eps=eps, compute_dtype=None)
    out_f32 = jax.block_until_ready(out_f32)
    assert jnp.allclose(out_f32, y_ref, atol=1e-4, rtol=1e-4), "f32 path mismatch"

    # 2) Default fast path: bf16 operands on the MXU, f32 accumulate/epilogue.
    out_fast = bert_prediction_head_transform(
        x, dense_w, dense_b, ln_gamma, ln_beta, eps=eps)   # compute_dtype=bf16
    out_fast = jax.block_until_ready(out_fast)
    assert jnp.allclose(out_fast, y_ref, atol=5e-2, rtol=5e-2), "bf16 path mismatch"

    print("KERNEL_OK")
</pallas_src>

<mosaic_0001>
module attributes {stable_mosaic.version = 11 : i64} {
  func.func @_bert_head_kernel(%arg0: i32, %arg1: memref<8x32xf32, #tpu.memory_space<vmem>>, %arg2: memref<32x32xf32, #tpu.memory_space<vmem>>, %arg3: memref<1x32xf32, #tpu.memory_space<vmem>>, %arg4: memref<1x32xf32, #tpu.memory_space<vmem>>, %arg5: memref<1x32xf32, #tpu.memory_space<vmem>>, %arg6: memref<8x32xf32, #tpu.memory_space<vmem>>) attributes {dimension_semantics = [#tpu.dimension_semantics<parallel>], iteration_bounds = array<i64: 2>, scalar_prefetch = 0 : i64, scratch_operands = 0 : i64, tpu.core_type = #tpu.core_type<tc>, window_params = [{transform_indices = @transform_0, window_bounds = array<i64: 8, 32>}, {pipeline_mode = #tpu.pipeline_mode<synchronous>, transform_indices = @transform_1, window_bounds = array<i64: 32, 32>}, {pipeline_mode = #tpu.pipeline_mode<synchronous>, transform_indices = @transform_2, window_bounds = array<i64: 1, 32>}, {pipeline_mode = #tpu.pipeline_mode<synchronous>, transform_indices = @transform_3, window_bounds = array<i64: 1, 32>}, {pipeline_mode = #tpu.pipeline_mode<synchronous>, transform_indices = @transform_4, window_bounds = array<i64: 1, 32>}, {transform_indices = @transform_5, window_bounds = array<i64: 8, 32>}]} {
    %c0 = arith.constant 0 : index
    %c0_0 = arith.constant 0 : index
    %0 = vector.load %arg1[%c0, %c0_0] : memref<8x32xf32, #tpu.memory_space<vmem>>, vector<8x32xf32>
    %c0_1 = arith.constant 0 : index
    %c0_2 = arith.constant 0 : index
    %1 = vector.load %arg2[%c0_1, %c0_2] : memref<32x32xf32, #tpu.memory_space<vmem>>, vector<32x32xf32>
    %cst = arith.constant dense<0.000000e+00> : vector<8x32xf32>
    %2 = tpu.matmul %0, %1, %cst {dimension_numbers = #tpu.dot_dimension_numbers<[1], [1], [0], [0], [0, 0, 1, 0], [], []>} : vector<8x32xf32>, vector<32x32xf32>, vector<8x32xf32> -> vector<8x32xf32>
    %c0_3 = arith.constant 0 : index
    %c0_4 = arith.constant 0 : index
    %3 = vector.load %arg3[%c0_3, %c0_4] : memref<1x32xf32, #tpu.memory_space<vmem>>, vector<1x32xf32>
    %4 = vector.broadcast %3 : vector<1x32xf32> to vector<8x32xf32>
    %5 = arith.addf %2, %4 : vector<8x32xf32>
    %cst_5 = arith.constant 5.000000e-01 : f32
    %6 = vector.broadcast %cst_5 : f32 to vector<8x32xf32>
    %7 = arith.mulf %6, %5 : vector<8x32xf32>
    %cst_6 = arith.constant 0.707106769 : f32
    %8 = vector.broadcast %cst_6 : f32 to vector<8x32xf32>
    %9 = arith.mulf %5, %8 : vector<8x32xf32>
    %10 = math.erf %9 : vector<8x32xf32>
    %cst_7 = arith.constant 1.000000e+00 : f32
    %11 = vector.broadcast %cst_7 : f32 to vector<8x32xf32>
    %12 = arith.addf %11, %10 : vector<8x32xf32>
    %13 = arith.mulf %7, %12 : vector<8x32xf32>
    %cst_8 = arith.constant dense<0.000000e+00> : vector<8xf32>
    %14 = vector.multi_reduction <add>, %13, %cst_8 [1] : vector<8x32xf32> to vector<8xf32>
    %15 = vector.shape_cast %14 : vector<8xf32> to vector<8x1xf32>
    %cst_9 = arith.constant 3.200000e+01 : f32
    %16 = vector.broadcast %cst_9 : f32 to vector<8x1xf32>
    %17 = arith.divf %15, %16 : vector<8x1xf32>
    %18 = arith.mulf %13, %13 : vector<8x32xf32>
    %cst_10 = arith.constant dense<0.000000e+00> : vector<8xf32>
    %19 = vector.multi_reduction <add>, %18, %cst_10 [1] : vector<8x32xf32> to vector<8xf32>
    %20 = vector.shape_cast %19 : vector<8xf32> to vector<8x1xf32>
    %cst_11 = arith.constant 3.200000e+01 : f32
    %21 = vector.broadcast %cst_11 : f32 to vector<8x1xf32>
    %22 = arith.divf %20, %21 : vector<8x1xf32>
    %23 = arith.mulf %17, %17 : vector<8x1xf32>
    %24 = arith.subf %22, %23 : vector<8x1xf32>
    %cst_12 = arith.constant 0.000000e+00 : f32
    %25 = vector.broadcast %cst_12 : f32 to vector<8x1xf32>
    %26 = arith.maximumf %24, %25 : vector<8x1xf32>
    %27 = vector.broadcast %17 : vector<8x1xf32> to vector<8x32xf32>
    %28 = arith.subf %13, %27 : vector<8x32xf32>
    %cst_13 = arith.constant 9.99999996E-13 : f32
    %29 = vector.broadcast %cst_13 : f32 to vector<8x1xf32>
    %30 = arith.addf %26, %29 : vector<8x1xf32>
    %31 = math.rsqrt %30 : vector<8x1xf32>
    %32 = vector.broadcast %31 : vector<8x1xf32> to vector<8x32xf32>
    %33 = arith.mulf %28, %32 : vector<8x32xf32>
    %c0_14 = arith.constant 0 : index
    %c0_15 = arith.constant 0 : index
    %34 = vector.load %arg4[%c0_14, %c0_15] : memref<1x32xf32, #tpu.memory_space<vmem>>, vector<1x32xf32>
    %35 = vector.broadcast %34 : vector<1x32xf32> to vector<8x32xf32>
    %36 = arith.mulf %33, %35 : vector<8x32xf32>
    %c0_16 = arith.constant 0 : index
    %c0_17 = arith.constant 0 : index
    %37 = vector.load %arg5[%c0_16, %c0_17] : memref<1x32xf32, #tpu.memory_space<vmem>>, vector<1x32xf32>
    %38 = vector.broadcast %37 : vector<1x32xf32> to vector<8x32xf32>
    %39 = arith.addf %36, %38 : vector<8x32xf32>
    %c0_18 = arith.constant 0 : index
    %c0_19 = arith.constant 0 : index
    %40 = vector.load %arg6[%c0_18, %c0_19] : memref<8x32xf32, #tpu.memory_space<vmem>>, vector<8x32xf32>
    tpu.vector_store %arg6[%c0_18, %c0_19], %39 {strides = array<i32>} : memref<8x32xf32, #tpu.memory_space<vmem>>, vector<8x32xf32>,
    return
  }
  func.func @transform_0(%arg0: i32) -> (i32, i32) {
    %c0_i32 = arith.constant 0 : i32
    %c0_i32_0 = arith.constant 0 : i32
    return %arg0, %c0_i32 : i32, i32
  }
  func.func @transform_1(%arg0: i32) -> (i32, i32) {
    %c0_i32 = arith.constant 0 : i32
    %c0_i32_0 = arith.constant 0 : i32
    %c0_i32_1 = arith.constant 0 : i32
    return %c0_i32, %c0_i32_0 : i32, i32
  }
  func.func @transform_2(%arg0: i32) -> (i32, i32) {
    %c0_i32 = arith.constant 0 : i32
    %c0_i32_0 = arith.constant 0 : i32
    %c0_i32_1 = arith.constant 0 : i32
    return %c0_i32, %c0_i32_0 : i32, i32
  }
  func.func @transform_3(%arg0: i32) -> (i32, i32) {
    %c0_i32 = arith.constant 0 : i32
    %c0_i32_0 = arith.constant 0 : i32
    %c0_i32_1 = arith.constant 0 : i32
    return %c0_i32, %c0_i32_0 : i32, i32
  }
  func.func @transform_4(%arg0: i32) -> (i32, i32) {
    %c0_i32 = arith.constant 0 : i32
    %c0_i32_0 = arith.constant 0 : i32
    %c0_i32_1 = arith.constant 0 : i32
    return %c0_i32, %c0_i32_0 : i32, i32
  }
  func.func @transform_5(%arg0: i32) -> (i32, i32) {
    %c0_i32 = arith.constant 0 : i32
    %c0_i32_0 = arith.constant 0 : i32
    return %arg0, %c0_i32 : i32, i32
  }
}

</mosaic_0001>

<bundles_post_ra>
// kernel: tpu_custom_call.1
= control target key start
LH: loop header
LB: loop body
LE: loop exit
PB: predicated region body
PF: predicated region fallthrough
CT: control target
= control target key end

     0   :  { %10 = vsyncpa [#allocation3], 0  ;;  %s899_s0 = inlined_call_operand.hbm [shape: f32[16,32], index: 0, kind: input, shape index: {}]   ;;  %s900_s1 = inlined_call_operand.hbm [shape: f32[32,32], index: 1, kind: input, shape index: {}]   ;;  %s901_s2 = inlined_call_operand.vmem [shape: f32[1,32], index: 2, kind: input, shape index: {}]   ;;  %s902_s3 = inlined_call_operand.vmem [shape: f32[1,32], index: 3, kind: input, shape index: {}]   ;;  %s903_s4 = inlined_call_operand.vmem [shape: f32[1,32], index: 4, kind: input, shape index: {}]   ;;  %s904_s5 = inlined_call_operand.hbm [shape: f32[16,32], index: 5, kind: output, shape index: {}]  }
   0x1   :  { %12 = vsyncpa [#allocation3 + $0x1], 0 }
   0x2   :  { %13 = vsyncpa [#allocation6], 0 }
   0x3   :  { %14 = vsyncpa [#allocation4], 0 }
   0x4   :  { %16 = vsyncpa [#allocation4 + $0x1], 0  ;;  %s742_s18 = smov 0   ;;  %s744_s19 = smov 0  }
   0x5   :  { %s746_s20 = smov 0   ;;  %s748_s21 = smov 0  }
   0x6 LB: > { %s174_s24 = sshll.u32 %s900_s1, 4  ;;  %s766_s25 = sadd.s32 4294967295, %s706_s21   ;;  %s706_s21 = sphi %s748_s21, %s914_s21   ;;  %s702_s20 = sphi %s746_s20, %s913_s20   ;;  %s698_s19 = sphi %s744_s19, %s912_s19   ;;  %s694_s18 = sphi %s742_s18, %s911_s18   ;;  %s175_s24 = int_to_ptr.hbm [resolvable:$true] %s174_s24 }
   0x7   : > { %p488_p0 = scmp.ge.s32.totalorder %s706_s21, 1  ;;  %p43_p1 = scmp.eq.s32.totalorder %s766_s25, 0 }
   0x8   : > { %p163_p2 = scmp.lt.s32.totalorder %s706_s21, 3  ;;  %s708_s27 = smov [#allocation5]  }
   0x9   : > { %s176_s28 = sshll.u32 %s708_s27, 4  ;;  %s709_s29 = smov 128   ;;  %s177_s28 = int_to_ptr.vmem [resolvable:$true] %s176_s28 }
   0xa   : > { %p771_p3 = pnand %p488_p0, %p163_p2  ;;  %s710_s30 = smov 8  }
   0xb   : > { %s487_s6 = sadd.s32 4294967294, %s706_s21   ;;  %s782_s7 = sadd.s32 1, %s706_s21  }
   0xc   : > { %p515_p4 = pneg %p771_p3  ;;  %s29_s8 = sadd.s32 1, %s702_s20 }
   0xd   : > { %s26_s9 = ssub.s32 %s706_s21, %s782_s7  ;;  %p36_p7 = scmp.ne.s32.totalorder %s702_s20, %s698_s19 }
   0xe   : > { %p516_p6 = pnand %p515_p4, %p43_p1  ;;  %p27_p8 = scmp.eq.s32.totalorder %s26_s9, 0 }
   0xf   : > { %p37_p9 = scmp.eq.s32.totalorder %s706_s21, 0  ;;  %p42_p10 = scmp.ne.s32.totalorder %s698_s19, %s694_s18 }
  0x10   : > { %518 = dma.hbm_to_vmem [thread:$0]  (!%p516_p6), %s175_s24, 512, %s177_s28, [#allocation6], %s709_s29, %s709_s29, %s710_s30  }
  0x11   : > { %p150_p11 = scmp.eq.s32.totalorder %s766_s25, 1  ;;  %p798_p12 = por %p43_p1, %p42_p10 }
  0x12   : > { %s794_s10 = scalar_select %p27_p8, %s702_s20, %s29_s8  }
  0x13   : > { %p802_p13 = por %p150_p11, %p36_p7  ;;  %p156_p0 = scmp.eq.s32.totalorder %s487_s6, 1 }
  0x14   : > { %p38_p2 = por %p37_p9, %p36_p7  ;;  %s199_s13 = sand.u32 1, %s702_s20  }
  0x15   : > { %p807_p4 = por %p156_p0, %p42_p10  ;;  %p528_p6 = scmp.lt.s32.totalorder %s706_s21, 2 }
  0x16   : > { %s491_s15 = sshll.u32 %s199_s13, 3  ;;  %s492_s16 = sshll.u32 %s706_s21, 3 }
  0x17   : > { %s207_s23 = scalar_lea.hbm %s899_s0, %s492_s16  ;;  %s203_s27 = scalar_lea.vmem [#allocation2], %s491_s15 }
  0x18   : > { %s209_s24 = sshll.u32 %s207_s23, 4  ;;  %s211_s28 = sshll.u32 %s203_s27, 4  ;;  %s210_s24 = int_to_ptr.hbm [resolvable:$true] %s209_s24  ;;  %s212_s28 = int_to_ptr.vmem [resolvable:$true] %s211_s28 }
  0x19   : > { %p816_p8 = pnand %p528_p6, %p38_p2  ;;  %s200_s30 = scalar_lea.sflag [#allocation3], %s199_s13 }
  0x1a   : > { %s606_s6 = sshra.s32 %s210_s24, 4  ;;  %s613_s15 = scalar_lea.hbm %s899_s0, 16  ;;  %s607_s6 = int_to_ptr.hbm [resolvable:$true] %s606_s6 }
  0x1b   : > { %s608_s8 = scalar_lea.hbm %s607_s6, 8  ;;  %p610_p9 = pneg %p816_p8 }
  0x1c   : > { %p609_p7 = scmp.ne.s32.totalorder %s607_s6, %s608_s8  ;;  %p614_p0 = scmp.lt.s32.totalorder %s607_s6, %s899_s0 }
  0x1d   : > { %p615_p2 = scmp.lt.s32.totalorder %s613_s15, %s608_s8 }
  0x1e   : > { %p611_p10 = pnand %p610_p9, %p609_p7 }
  0x1f   : > { %p616_p6 = por %p615_p2, %p614_p0 }
  0x20   : > { %p612_p11 = pneg %p611_p10 }
  0x22   : > { %p617_p5 = pnand %p616_p6, %p612_p11 }
  0x24   : > { %620 = shalt.err (!%p617_p5)
}
  0x25   : > { %522 = dma.hbm_to_vmem [thread:$0]  (!%p816_p8), %s210_s24, 128, %s212_s28, %s200_s30  }
  0x26   : > { %220 = sbr.rel (%p771_p3) target bundleno = 401 (0x191), region = 40  ;;  %s833_s13 = sand.u32 (!%p771_p3), 1, %s698_s19  }
  0x27   : > { %s494_s23 = sshll.u32 (!%p771_p3), %s833_s13, 3  ;;  %s223_s27 = scalar_lea.sflag (!%p771_p3), [#allocation3], %s833_s13 }
  0x28   : > { %s226_s6 = scalar_lea.vmem (!%p771_p3), [#allocation2], %s494_s23 }
  0x2b   : > { %681 = dma.done.wait (%p798_p12), %s223_s27, 128  }
  0x2c   : > { %683 = vsyncadd (%p798_p12), %s223_s27, 4294967168 }
  0x2d   : > { %685 = dma.done.wait (%p43_p1), [#allocation6], 512  }
  0x2e   : > { %687 = vsyncadd (%p43_p1), [#allocation6], 4294966784  ;;  %vm268_vm0 = vcmask 261120   ;;  %v263_v0 = vld [vmem:[#allocation5 + $0x18] sm:$0xff]  ;;  %v262_v1 = vld [vmem:[#allocation5 + $0x10] sm:$0xff]  ;;  %v711_v50 = vmov 32.0  }
  0x2f   : > { %497 = vmatpush.xpose.msk.msra.mxu0 %vm268_vm0, %v263_v0  ;;  %v261_v2 = vld [vmem:[#allocation5 + $0x8] sm:$0xff]  ;;  %v260_v3 = vld [vmem:[#allocation5] sm:$0xff]  ;;  %v259_v4 = vld [vmem:[%s226_s6] sm:$0xff]  ;;  %s504_s24 = sshll.u32 %s766_s25, 3  ;;  %s258_s25 = scalar_lea.vmem [#allocation7], %s494_s23 }
  0x30   : > { %v567_v5 = vld [vmem:[%s901_s2] ss:$0 sm:$0xff]  ;;  %s402_s9 = scalar_lea.hbm %s904_s5, %s504_s24  ;;  %s404_s17 = sshll.u32 %s258_s25, 4  ;;  %s405_s17 = int_to_ptr.vmem [resolvable:$true] %s404_s17 }
  0x31   : > { %s406_s22 = sshll.u32 %s402_s9, 4  ;;  %s392_s27 = scalar_lea.sflag [#allocation4], %s833_s13  ;;  %s407_s22 = int_to_ptr.hbm [resolvable:$true] %s406_s22 }
  0x32   : > { %s650_s6 = sshra.s32 %s407_s22, 4  ;;  %s656_s23 = scalar_lea.hbm %s904_s5, 16  ;;  %s651_s6 = int_to_ptr.hbm [resolvable:$true] %s650_s6 }
  0x33   : > { %498 = vmatpush.xpose.msk.msra.mxu0 %vm268_vm0, %v262_v1  ;;  %s652_s26 = scalar_lea.hbm %s651_s6, 8  ;;  %p657_p12 = scmp.lt.s32.totalorder %s651_s6, %s904_s5 }
  0x34   : > { %p653_p1 = scmp.ne.s32.totalorder %s651_s6, %s652_s26  ;;  %p658_p8 = scmp.lt.s32.totalorder %s656_s23, %s652_s26 }
  0x36   : > { %p654_p3 = pnand %p653_p1, %p802_p13  ;;  %p659_p7 = por %p658_p8, %p657_p12 }
  0x37   : > { %499 = vmatpush.xpose.msk.msra.mxu0 %vm268_vm0, %v261_v2 }
  0x38   : > { %p655_p5 = pneg %p654_p3 }
  0x3a   : > { %p660_p9 = pnand %p659_p7, %p655_p5 }
  0x3b   : > { %500 = vmatpush.xpose.msk.msra.mxu0 %vm268_vm0, %v260_v3 }
  0x3e   : > { %501 = vmatmul.msk.f32.vlgmr.msra.gmra.mxu0 %vm268_vm0, %v259_v4 }
  0xbb   : > { %v301_v6 = vpop.f32.mrf.mxu0 }
  0xbc   : > { %v302_v7 = vadd.f32 %v567_v5, %v301_v6 }
  0xbe   : > { %v305_v8 = vmul.f32 0.70710677, %v302_v7  ;;  %v304_v44 = vmul.f32 0.5, %v302_v7 }
  0xc0   : > { %v306_v9 = vmul.f32 %v305_v8, %v305_v8 }
  0xc2   : > { %v307_v10 = vmin.f32 %v306_v9, 16.0 }
  0xc4   : > { %v308_v11 = vmul.f32 2.1237322e-06, %v307_v10  ;;  %v319_v12 = vmul.f32 3.8918573e-05, %v307_v10 }
  0xc6   : > { %v309_v13 = vadd.f32 0.00028619796, %v308_v11  ;;  %v320_v14 = vadd.f32 0.001143296, %v319_v12  ;;  %v569_v11 = vld [vmem:[%s903_s4] ss:$0 sm:$0xff] }
  0xc8   : > { %v310_v15 = vmul.f32 %v309_v13, %v307_v10  ;;  %v321_v16 = vmul.f32 %v320_v14, %v307_v10 }
  0xca   : > { %v322_v17 = vadd.f32 0.014752088, %v321_v16  ;;  %v311_v18 = vadd.f32 0.0036580483, %v310_v15 }
  0xcc   : > { %v323_v19 = vmul.f32 %v322_v17, %v307_v10  ;;  %v312_v21 = vmul.f32 %v311_v18, %v307_v10 }
  0xce   : > { %v324_v20 = vadd.f32 0.112945676, %v323_v19  ;;  %v313_v24 = vadd.f32 0.05243302, %v312_v21 }
  0xd0   : > { %v325_v22 = vmul.f32 %v324_v20, %v307_v10  ;;  %v314_v27 = vmul.f32 %v313_v24, %v307_v10 }
  0xd2   : > { %v326_v23 = vadd.f32 0.4994258, %v325_v22  ;;  %v315_v28 = vadd.f32 0.18741608, %v314_v27 }
  0xd4   : > { %v327_v25 = vmul.f32 %v326_v23, %v307_v10  ;;  %v316_v30 = vmul.f32 %v315_v28, %v307_v10 }
  0xd6   : > { %v328_v26 = vadd.f32 1.0, %v327_v25  ;;  %v317_v34 = vadd.f32 1.1283791, %v316_v30 }
  0xd8   : > { %570 = vrcp.f32 %v328_v26  ;;  %v340_v33 = vand.u32 2147483648, %v328_v26  ;;  %v338_v36 = vand.u32 2147483647, %v328_v26  ;;  %vm334_vm2 = vweird.f32 %v328_v26 }
  0xd9   : > { %v318_v39 = vmul.f32 %v317_v34, %v305_v8  ;;  %572 = vrcp.f32 %v711_v50  ;;  %v568_v8 = vld [vmem:[%s902_s3] ss:$0 sm:$0xff] }
  0xda   : > { %v341_v38 = vor.u32 1.1754944e-38, %v340_v33  ;;  %vm339_vm4 = vcmp.eq.f32.partialorder %v338_v36, 8.507059e+37 }
  0xde   : > { %v571_v29 = vpop.eup %570 }
  0xdf   : > { %v330_v31 = vmul.f32 %v571_v29, %v328_v26  ;;  %vm335_vm1 = vweird.f32 %v571_v29  ;;  %v573_v51 = vpop.eup %572 }
  0xe0   : > { %vm336_vm3 = vmor %vm334_vm2, %vm335_vm1  ;;  %v352_v52 = vmul.f32 32.0, %v573_v51  ;;  %vm356_vm5 = vweird.f32 %v573_v51 }
  0xe1   : > { %v331_v32 = vsub.f32 1.0, %v330_v31 }
  0xe2   : > { %v353_v53 = vsub.f32 1.0, %v352_v52 }
  0xe3   : > { %v332_v35 = vmul.f32 %v571_v29, %v331_v32 }
  0xe4   : > { %v354_v54 = vmul.f32 %v573_v51, %v353_v53 }
  0xe5   : > { %v333_v37 = vadd.f32 %v571_v29, %v332_v35 }
  0xe6   : > { %v355_v55 = vadd.f32 %v573_v51, %v354_v54 }
  0xe7   : > { %v337_v40 = vsel %vm336_vm3, %v571_v29, %v333_v37 }
  0xe8   : > { %v342_v41 = vsel %vm339_vm4, %v341_v38, %v337_v40  ;;  %v357_v57 = vsel %vm356_vm5, %v573_v51, %v355_v55 }
  0xe9   : > { %v343_v42 = vmul.f32 %v342_v41, %v318_v39 }
  0xeb   : > { %v502_v43 = vclamps-f32 %v343_v42, 1.0 }
  0xed   : > { %v346_v45 = vadd.f32 1.0, %v502_v43 }
  0xef   : > { %v347_v46 = vmul.f32 %v346_v45, %v304_v44 }
  0xf1   : > { %v348_v47 = vsel %vm268_vm0, %v347_v46, 0.0  ;;  %v359_v48 = vmul.f32 %v347_v46, %v347_v46 }
  0xf2   : > { %349 = vadd.xlane.f32.xlu0 %v348_v47 }
  0xf3   : > { %v360_v49 = vsel %vm268_vm0, %v359_v48, 0.0 }
  0xfa   : > { %361 = vadd.xlane.f32.xlu0 %v360_v49 }
 0x165   : > { %v350_v56 = vpop.xlane.xlu0 %349 }
 0x166   : > { %v358_v58 = vmul.f32 %v357_v57, %v350_v56 }
 0x168   : > { %v364_v60 = vmul.f32 %v358_v58, %v358_v58  ;;  %v367_v7 = vsub.f32 %v347_v46, %v358_v58 }
 0x16d   : > { %v362_v59 = vpop.xlane.xlu0 %361 }
 0x16e   : > { %v363_v61 = vmul.f32 %v362_v59, %v357_v57 }
 0x170   : > { %v365_v62 = vsub.f32 %v363_v61, %v364_v60 }
 0x172   : > { %v366_v63 = vmax.f32 %v365_v62, 0.0 }
 0x174   : > { %v368_v0 = vadd.f32 1e-12, %v366_v63 }
 0x176   : > { %574 = vrsqrt.f32 %v368_v0  ;;  %vm375_vm7 = vweird.f32 %v368_v0 }
 0x17c   : > { %v575_v1 = vpop.eup %574 }
 0x17d   : > { %v370_v2 = vmul.f32 %v575_v1, %v368_v0  ;;  %vm376_vm6 = vweird.f32 %v575_v1 }
 0x17e   : > { %vm377_vm8 = vmor %vm375_vm7, %vm376_vm6 }
 0x17f   : > { %v371_v3 = vmul.f32 %v575_v1, %v370_v2 }
 0x181   : > { %v372_v4 = vmul.f32 0.5, %v371_v3 }
 0x183   : > { %v373_v5 = vsub.f32 1.5, %v372_v4 }
 0x185   : > { %v374_v6 = vmul.f32 %v575_v1, %v373_v5 }
 0x187   : > { %v378_v9 = vsel %vm377_vm8, %v575_v1, %v374_v6 }
 0x188   : > { %v379_v10 = vmul.f32 %v378_v9, %v367_v7 }
 0x18a   : > { %v384_v12 = vmul.f32 %v568_v8, %v379_v10 }
 0x18c   : > { %v389_v13 = vadd.f32 %v569_v11, %v384_v12 }
 0x18e   : > { %390 = vst.msk [vmem:[%s258_s25] sm:$0xff] %vm268_vm0, %v389_v13 }
 0x18f   : > { %663 = shalt.err (!%p660_p9)
}
 0x190   : > { %513 = dma.vmem_to_hbm [thread:$0]  (%p802_p13), %s405_s17, 128, %s407_s22, %s392_s27  }
 0x191 PF: > { %s418_s13 = sand.u32 1, %s694_s18   ;;  %p910_p10 = scmp.ge.s32.totalorder %s706_s21, 2 }
 0x192   : > { %s419_s30 = scalar_lea.sflag [#allocation4], %s418_s13 }
 0x193   : > { %p524_p11 = pnand %p910_p10, %p807_p4 }
 0x195   : > { %p525_p0 = pneg %p524_p11 }
 0x197   : > { %689 = dma.done.wait (%p525_p0), %s419_s30, 128  }
 0x198   : > { %691 = vsyncadd (%p525_p0), %s419_s30, 4294967168  ;;  %p19_p2 = scmp.ge.s32.totalorder %s782_s7, 4   ;;  %s911_s18 = smov %s698_s19 }
 0x199   : > { %s912_s19 = smov %s702_s20  ;;  %s913_s20 = smov %s794_s10 }
 0x19a   : > { %s914_s21 = smov %s782_s7  ;;  %21 = sbr.rel (!%p19_p2) target bundleno = 6 (0x6), region = 89 }
 0x19f   :  { %425 = vsyncpa [#allocation3], 1 }
 0x1a0   :  { %427 = vsyncpa [#allocation3 + $0x1], 1 }
 0x1a1   :  { %428 = vsyncpa [#allocation6], 1 }
 0x1a2   :  { %429 = vsyncpa [#allocation4], 1 }
 0x1a3   :  { %431 = vsyncpa [#allocation4 + $0x1], 1 }

</bundles_post_ra>
